<compile_context>
chip_gen: v6e
topology: v6e:2x2x1
jax: 0.10.0
libtpu: 0.0.40
codegen_flags: <defaults>
</compile_context>

<pallas_src>
import jax
import jax.numpy as jnp
from jax.experimental import pallas as pl
from jax.experimental.pallas import tpu as pltpu


class Config:
    batch_size = 100
    latent_dim = 20
    num_classes = 10


def _identity_kernel(z_ref, out_ref):
    # Fusion anchor: identity copy of the full (B, D) tile resident in VMEM.
    # Real per-element compute can be dropped in here later without changing
    # the wrapper-side layout plumbing.
    out_ref[...] = z_ref[...]


@jax.jit
def gaussian_layer_forward(z):
    """z: (B, D) -> (B, 1, D), exactly torch's z.unsqueeze(1).

    The Pallas kernel runs on the lane/sublane-dense 2-D (B, D) layout; the
    rank change is a metadata-only reshape applied afterwards in the wrapper.
    """
    B, D = z.shape
    out2d = pl.pallas_call(
        _identity_kernel,
        out_shape=jax.ShapeDtypeStruct((B, D), z.dtype),
        # No grid: one full-array VMEM tile; (8, 128) constraint is satisfied
        # because the block equals the full array dims.
        in_specs=[pl.BlockSpec(memory_space=pltpu.MemorySpace.VMEM)],
        out_specs=pl.BlockSpec(memory_space=pltpu.MemorySpace.VMEM),
    )(z)
    # Metadata-only unsqueeze (no data movement), done AFTER the kernel so the
    # kernel's stores stay unmasked/contiguous.
    return out2d[:, None, :]


class GaussianLayer:
    """JAX mirror of the PyTorch module: holds `mean`, forward ignores it."""

    def __init__(self):
        self._mean = None  # lazily materialized; unused in forward

    @property
    def mean(self):
        if self._mean is None:
            # torch.zeros(num_classes, latent_dim) in the reference module.
            self._mean = jnp.zeros(
                (Config.num_classes, Config.latent_dim), jnp.float32
            )
        return self._mean

    def __call__(self, z):
        return gaussian_layer_forward(z)


if __name__ == "__main__":
    key = jax.random.PRNGKey(0)
    B, D = 8, Config.latent_dim  # small batch, latent_dim = 20
    z = jax.random.normal(key, (B, D), dtype=jnp.float32)

    layer = GaussianLayer()
    out = layer(z)
    out = jax.block_until_ready(out)

    # Correctness check against the pure-JAX reference of z.unsqueeze(1).
    ref = z[:, None, :]
    assert out.shape == (B, 1, D), out.shape
    assert out.dtype == z.dtype
    assert jnp.array_equal(out, ref), "mismatch vs z.unsqueeze(1) reference"

    print("KERNEL_OK")
</pallas_src>

<mosaic_0001>
module attributes {stable_mosaic.version = 11 : i64} {
  func.func @_identity_kernel(%arg0: memref<8x20xf32, #tpu.memory_space<vmem>>, %arg1: memref<8x20xf32, #tpu.memory_space<vmem>>) attributes {dimension_semantics = [], scalar_prefetch = 0 : i64, scratch_operands = 0 : i64, tpu.core_type = #tpu.core_type<tc>} {
    %c0 = arith.constant 0 : index
    %c0_0 = arith.constant 0 : index
    %0 = vector.load %arg0[%c0, %c0_0] : memref<8x20xf32, #tpu.memory_space<vmem>>, vector<8x20xf32>
    %c0_1 = arith.constant 0 : index
    %c0_2 = arith.constant 0 : index
    %1 = vector.load %arg1[%c0_1, %c0_2] : memref<8x20xf32, #tpu.memory_space<vmem>>, vector<8x20xf32>
    tpu.vector_store %arg1[%c0_1, %c0_2], %0 {strides = array<i32>} : memref<8x20xf32, #tpu.memory_space<vmem>>, vector<8x20xf32>,
    return
  }
}

</mosaic_0001>

<bundles_post_ra>
// kernel: gaussian_layer_forward.1
= control target key start
LH: loop header
LB: loop body
LE: loop exit
PB: predicated region body
PF: predicated region fallthrough
CT: control target
= control target key end

     0   :  { %6 = vsyncpa [#allocation3], 0  ;;  %s103_s0 = inlined_call_operand.hbm [shape: f32[8,20], index: 0, kind: input, shape index: {}]   ;;  %s104_s1 = inlined_call_operand.hbm [shape: f32[8,20], index: 1, kind: output, shape index: {}]  }
   0x1   :  { %7 = vsyncpa [#allocation4], 0  ;;  %s85_s6 = smov [#allocation2]  }
   0x2   :  { %s14_s7 = sshll.u32 %s85_s6, 4  ;;  %s15_s7 = int_to_ptr.vmem [resolvable:$true] %s14_s7 }
   0x3   :  { %s49_s8 = scalar_lea.vmem %s15_s7, 128  ;;  %p54_p1 = scmp.lt.s32.totalorder %s15_s7, %s15_s7 }
   0x4   :  { %p50_p0 = scmp.ne.s32.totalorder %s15_s7, %s49_s8  ;;  %p55_p2 = scmp.lt.s32.totalorder %s49_s8, %s49_s8 }
   0x6   :  { %p56_p3 = por %p55_p2, %p54_p1 }
   0x8   :  { %p57_p4 = pnand %p56_p3, %p50_p0 }
   0xa   :  { %60 = shalt.err (!%p57_p4)
}
   0xb   :  { %17 = dma.hbm_to_vmem [thread:$0]  %s103_s0, 128, %s15_s7, [#allocation3]  }
   0xc   :  { %81 = dma.done.wait [#allocation3], 128  }
   0xd   :  { %82 = vsyncadd [#allocation3], 4294967168  ;;  %s86_s11 = smov [#allocation5]   ;;  %vm22_vm0 = vcmask 162816   ;;  %v21_v0 = vld [vmem:[#allocation2] sm:$0xff] }
   0xe   :  { %s30_s12 = sshll.u32 %s86_s11, 4  ;;  %23 = vst.msk [vmem:[#allocation5] sm:$0xff] %vm22_vm0, %v21_v0  ;;  %s31_s12 = int_to_ptr.vmem [resolvable:$true] %s30_s12 }
   0xf   :  { %s61_s13 = scalar_lea.vmem %s31_s12, 128  ;;  %p66_p6 = scmp.lt.s32.totalorder %s31_s12, %s31_s12 }
  0x10   :  { %p62_p5 = scmp.ne.s32.totalorder %s31_s12, %s61_s13  ;;  %p67_p7 = scmp.lt.s32.totalorder %s61_s13, %s61_s13 }
  0x12   :  { %p68_p8 = por %p67_p7, %p66_p6 }
  0x14   :  { %p69_p9 = pnand %p68_p8, %p62_p5 }
  0x16   :  { %72 = shalt.err (!%p69_p9)
}
  0x17   :  { %33 = dma.vmem_to_hbm [thread:$0]  %s31_s12, 128, %s104_s1, [#allocation4]  }
  0x18   :  { %83 = dma.done.wait [#allocation4], 128  }
  0x19   :  { %84 = vsyncadd [#allocation4], 4294967168 }
  0x1a   :  { %37 = vsyncpa [#allocation3], 1 }
  0x1b   :  { %38 = vsyncpa [#allocation4], 1 }

</bundles_post_ra>
